<compile_context>
chip_gen: v6e
topology: v6e:2x2x1
jax: 0.10.0
libtpu: 0.0.40
codegen_flags: <defaults>
</compile_context>

<pallas_src>
import math

import jax
import jax.numpy as jnp
import numpy as np
from jax.experimental import pallas as pl
from jax.experimental.pallas import tpu as pltpu

# ----------------------------- config ---------------------------------------
B = 2            # batch
S = 16           # sequence length
H = 32           # hidden size
NH = 4           # num_attention_heads
DH = H // NH     # attention_head_size
BS = B * S       # flattened batch*seq
LN_EPS = 1e-12   # BERT layer_norm_eps
SCALE = 1.0 / math.sqrt(DH)
NEG_BIG = -1e9   # cross-batch block mask value


# ----------------------------- kernel ---------------------------------------
def bert_attention_kernel(x_ref, keyinfo_ref, w_ref, vec_ref, o_ref):
    x = x_ref[...]                         # (BS, H)   flattened hidden_states
    km = keyinfo_ref[0:1, :]               # (1, NH*BS) per-key additive mask (head-tiled)
    kb = keyinfo_ref[1:2, :]               # (1, NH*BS) key batch id          (head-tiled)
    vec = vec_ref[...]                     # (8, H): bq*s, bk, bv, bo, gamma, beta, 0, 0

    # --- Q/K/V projections (scale folded into wq / bq at prep time) ---------
    q = jnp.dot(x, w_ref[0], preferred_element_type=jnp.float32) + vec[0:1, :]
    k = jnp.dot(x, w_ref[1], preferred_element_type=jnp.float32) + vec[1:2, :]
    v = jnp.dot(x, w_ref[2], preferred_element_type=jnp.float32) + vec[2:3, :]

    # --- stack heads along sublanes with head-masked columns ----------------
    # row h*BS + j of {k,v}_stack holds key j with only head-h columns kept.
    col = jax.lax.broadcasted_iota(jnp.int32, (BS, H), 1)
    k_parts, v_parts, hm_parts = [], [], []
    for h in range(NH):                                    # static; mask build only
        keep = (col >= h * DH) & (col < (h + 1) * DH)      # (BS, H) bool
        k_parts.append(jnp.where(keep, k, 0.0))
        v_parts.append(jnp.where(keep, v, 0.0))
        hm_parts.append(keep.astype(jnp.float32))
    k_stack = jnp.concatenate(k_parts, axis=0)             # (NH*BS, H)
    v_stack = jnp.concatenate(v_parts, axis=0)             # (NH*BS, H)
    hmask = jnp.concatenate(hm_parts, axis=0)              # (NH*BS, H) per-head ones

    # --- one lane-dense score matmul over all heads: (BS, NH*BS) ------------
    scores = jax.lax.dot_general(q, k_stack, (((1,), (1,)), ((), ())),
                                 preferred_element_type=jnp.float32)

    # additive mask built in-kernel: per-key BERT mask on same-batch keys,
    # -1e9 on cross-batch keys (keeps the flattened batches independent).
    ri = jax.lax.broadcasted_iota(jnp.int32, (BS, NH * BS), 0)
    b_i = jnp.zeros((BS, NH * BS), jnp.float32)
    for b in range(1, B):                                  # static; no vector div needed
        b_i = b_i + (ri >= b * S).astype(jnp.float32)      # query batch id
    scores = scores + jnp.where(b_i == kb, km, NEG_BIG)

    # --- softmax per (row, head-block) ---------------------------------------
    # per-row max over all heads is a valid per-block shift; masked entries -> 0
    m = jnp.max(scores, axis=-1, keepdims=True)
    p = jnp.exp(scores - m)                                # (BS, NH*BS)
    denom = jnp.dot(p, hmask, preferred_element_type=jnp.float32)    # (BS, H) per-head sums
    ctx = jnp.dot(p, v_stack, preferred_element_type=jnp.float32)    # (BS, H) un-normalized
    ctx = ctx * pl.reciprocal(denom, approx=True)

    # --- BertSelfOutput: dense + residual + LayerNorm ------------------------
    out = jnp.dot(ctx, w_ref[3], preferred_element_type=jnp.float32) + vec[3:4, :]
    y = out + x
    mu = jnp.mean(y, axis=-1, keepdims=True)
    var = jnp.mean((y - mu) ** 2, axis=-1, keepdims=True)
    y_norm = (y - mu) * jax.lax.rsqrt(var + LN_EPS)
    o_ref[...] = (y_norm * vec[4:5, :] + vec[5:6, :]).astype(o_ref.dtype)


# ----------------------------- one-time parameter packing -------------------
def prepare_params(params):
    """Pack weights/vectors once, outside the hot path."""
    w = jnp.stack([params["wq"] * SCALE, params["wk"],
                   params["wv"], params["wo"]], axis=0)               # (4, H, H)
    vec = jnp.concatenate([params["bq"] * SCALE, params["bk"], params["bv"],
                           params["bo"], params["gamma"], params["beta"],
                           jnp.zeros((2, H), jnp.float32)], axis=0)   # (8, H)
    key_batch = jnp.tile(jnp.repeat(jnp.arange(B, dtype=jnp.float32), S)[None, :],
                         (1, NH))                                     # (1, NH*BS)
    return w, vec, key_batch


# ----------------------------- jitted wrapper --------------------------------
@jax.jit
def bert_attention(x, mask, w, vec, key_batch):
    """x: (B,S,H) f32, mask: (B,S) f32 additive per-key mask -> (B,S,H) f32."""
    x2d = x.reshape(BS, H)
    km = jnp.tile(mask.reshape(1, BS).astype(jnp.float32), (1, NH))   # (1, NH*BS)
    keyinfo = jnp.concatenate([km, key_batch], axis=0)                # (2, NH*BS)

    vmem = pl.BlockSpec(memory_space=pltpu.MemorySpace.VMEM)
    out2d = pl.pallas_call(
        bert_attention_kernel,
        out_shape=jax.ShapeDtypeStruct((BS, H), jnp.float32),
        in_specs=[vmem, vmem, vmem, vmem],
        out_specs=vmem,
        input_output_aliases={0: 0},      # x2d and output share the HBM buffer
    )(x2d, keyinfo, w, vec)
    return out2d.reshape(B, S, H)


# ----------------------------- reference ------------------------------------
def bert_attention_ref(x, mask, params):
    q = x @ params["wq"] + params["bq"]
    k = x @ params["wk"] + params["bk"]
    v = x @ params["wv"] + params["bv"]
    tfs = lambda t: t.reshape(B, S, NH, DH).transpose(0, 2, 1, 3)
    q, k, v = tfs(q), tfs(k), tfs(v)
    scores = jnp.einsum("bhqd,bhkd->bhqk", q, k) * SCALE
    scores = scores + mask[:, None, None, :]
    probs = jax.nn.softmax(scores, axis=-1)
    ctx = jnp.einsum("bhqk,bhkd->bhqd", probs, v)
    ctx = ctx.transpose(0, 2, 1, 3).reshape(B, S, H)
    out = ctx @ params["wo"] + params["bo"]
    y = out + x
    mu = y.mean(-1, keepdims=True)
    var = ((y - mu) ** 2).mean(-1, keepdims=True)
    return (y - mu) / jnp.sqrt(var + LN_EPS) * params["gamma"] + params["beta"]


# ----------------------------- main ------------------------------------------
if __name__ == "__main__":
    key = jax.random.PRNGKey(0)
    keys = jax.random.split(key, 12)

    init = lambda k, shape: (0.02 * jax.random.normal(k, shape)).astype(jnp.float32)
    params = {
        "wq": init(keys[0], (H, H)), "bq": init(keys[1], (1, H)),
        "wk": init(keys[2], (H, H)), "bk": init(keys[3], (1, H)),
        "wv": init(keys[4], (H, H)), "bv": init(keys[5], (1, H)),
        "wo": init(keys[6], (H, H)), "bo": init(keys[7], (1, H)),
        "gamma": (1.0 + init(keys[8], (1, H))).astype(jnp.float32),
        "beta": init(keys[9], (1, H)),
    }

    x = jax.random.normal(keys[10], (B, S, H), dtype=jnp.float32)
    # BERT-style additive mask: last 3 keys of batch element 1 are masked out.
    keep = jnp.ones((B, S), dtype=jnp.float32).at[1, S - 3:].set(0.0)
    mask = (1.0 - keep) * -10000.0

    w, vec, key_batch = prepare_params(params)            # one-time packing
    out = bert_attention(x, mask, w, vec, key_batch)
    jax.block_until_ready(out)

    ref = bert_attention_ref(x, mask, params)
    np.testing.assert_allclose(np.asarray(out), np.asarray(ref),
                               rtol=1e-3, atol=1e-3)
    print("KERNEL_OK")
</pallas_src>

<mosaic_0001>
module attributes {stable_mosaic.version = 11 : i64} {
  func.func @bert_attention_kernel(%arg0: memref<32x32xf32, #tpu.memory_space<vmem>>, %arg1: memref<2x128xf32, #tpu.memory_space<vmem>>, %arg2: memref<4x32x32xf32, #tpu.memory_space<vmem>>, %arg3: memref<8x32xf32, #tpu.memory_space<vmem>>, %arg4: memref<32x32xf32, #tpu.memory_space<vmem>>) attributes {dimension_semantics = [], scalar_prefetch = 0 : i64, scratch_operands = 0 : i64, tpu.core_type = #tpu.core_type<tc>} {
    %c0 = arith.constant 0 : index
    %c0_0 = arith.constant 0 : index
    %0 = vector.load %arg0[%c0, %c0_0] : memref<32x32xf32, #tpu.memory_space<vmem>>, vector<32x32xf32>
    %c0_1 = arith.constant 0 : index
    %c0_2 = arith.constant 0 : index
    %1 = vector.load %arg1[%c0_1, %c0_2] : memref<2x128xf32, #tpu.memory_space<vmem>>, vector<1x128xf32>
    %c1 = arith.constant 1 : index
    %c0_3 = arith.constant 0 : index
    %2 = vector.load %arg1[%c1, %c0_3] : memref<2x128xf32, #tpu.memory_space<vmem>>, vector<1x128xf32>
    %c0_4 = arith.constant 0 : index
    %c0_5 = arith.constant 0 : index
    %3 = vector.load %arg3[%c0_4, %c0_5] : memref<8x32xf32, #tpu.memory_space<vmem>>, vector<8x32xf32>
    %c0_6 = arith.constant 0 : index
    %c0_7 = arith.constant 0 : index
    %c0_8 = arith.constant 0 : index
    %4 = vector.load %arg2[%c0_6, %c0_7, %c0_8] : memref<4x32x32xf32, #tpu.memory_space<vmem>>, vector<1x32x32xf32>
    %5 = vector.shape_cast %4 : vector<1x32x32xf32> to vector<32x32xf32>
    %cst = arith.constant dense<0.000000e+00> : vector<32x32xf32>
    %6 = tpu.matmul %0, %5, %cst {dimension_numbers = #tpu.dot_dimension_numbers<[1], [0], [0], [1], [0, 0, 1, 1], [], []>} : vector<32x32xf32>, vector<32x32xf32>, vector<32x32xf32> -> vector<32x32xf32>
    %7 = vector.extract_strided_slice %3 {offsets = [0, 0], sizes = [1, 32], strides = [1, 1]} : vector<8x32xf32> to vector<1x32xf32>
    %8 = vector.broadcast %7 : vector<1x32xf32> to vector<32x32xf32>
    %9 = arith.addf %6, %8 : vector<32x32xf32>
    %c1_9 = arith.constant 1 : index
    %c0_10 = arith.constant 0 : index
    %c0_11 = arith.constant 0 : index
    %10 = vector.load %arg2[%c1_9, %c0_10, %c0_11] : memref<4x32x32xf32, #tpu.memory_space<vmem>>, vector<1x32x32xf32>
    %11 = vector.shape_cast %10 : vector<1x32x32xf32> to vector<32x32xf32>
    %cst_12 = arith.constant dense<0.000000e+00> : vector<32x32xf32>
    %12 = tpu.matmul %0, %11, %cst_12 {dimension_numbers = #tpu.dot_dimension_numbers<[1], [0], [0], [1], [0, 0, 1, 1], [], []>} : vector<32x32xf32>, vector<32x32xf32>, vector<32x32xf32> -> vector<32x32xf32>
    %13 = vector.extract_strided_slice %3 {offsets = [1, 0], sizes = [1, 32], strides = [1, 1]} : vector<8x32xf32> to vector<1x32xf32>
    %14 = vector.broadcast %13 : vector<1x32xf32> to vector<32x32xf32>
    %15 = arith.addf %12, %14 : vector<32x32xf32>
    %c2 = arith.constant 2 : index
    %c0_13 = arith.constant 0 : index
    %c0_14 = arith.constant 0 : index
    %16 = vector.load %arg2[%c2, %c0_13, %c0_14] : memref<4x32x32xf32, #tpu.memory_space<vmem>>, vector<1x32x32xf32>
    %17 = vector.shape_cast %16 : vector<1x32x32xf32> to vector<32x32xf32>
    %cst_15 = arith.constant dense<0.000000e+00> : vector<32x32xf32>
    %18 = tpu.matmul %0, %17, %cst_15 {dimension_numbers = #tpu.dot_dimension_numbers<[1], [0], [0], [1], [0, 0, 1, 1], [], []>} : vector<32x32xf32>, vector<32x32xf32>, vector<32x32xf32> -> vector<32x32xf32>
    %19 = vector.extract_strided_slice %3 {offsets = [2, 0], sizes = [1, 32], strides = [1, 1]} : vector<8x32xf32> to vector<1x32xf32>
    %20 = vector.broadcast %19 : vector<1x32xf32> to vector<32x32xf32>
    %21 = arith.addf %18, %20 : vector<32x32xf32>
    %22 = tpu.iota {dimensions = array<i32: 1>} : vector<32x32xi32>
    %c0_i32 = arith.constant 0 : i32
    %23 = vector.broadcast %c0_i32 : i32 to vector<32x32xi32>
    %24 = arith.cmpi sge, %22, %23 : vector<32x32xi32>
    %c8_i32 = arith.constant 8 : i32
    %25 = vector.broadcast %c8_i32 : i32 to vector<32x32xi32>
    %26 = arith.cmpi slt, %22, %25 : vector<32x32xi32>
    %27 = arith.andi %24, %26 : vector<32x32xi1>
    %cst_16 = arith.constant 0.000000e+00 : f32
    %28 = vector.broadcast %cst_16 : f32 to vector<32x32xf32>
    %29 = arith.select %27, %15, %28 : vector<32x32xi1>, vector<32x32xf32>
    %cst_17 = arith.constant 0.000000e+00 : f32
    %30 = vector.broadcast %cst_17 : f32 to vector<32x32xf32>
    %31 = arith.select %27, %21, %30 : vector<32x32xi1>, vector<32x32xf32>
    %32 = arith.extui %27 : vector<32x32xi1> to vector<32x32xi32>
    %33 = arith.sitofp %32 : vector<32x32xi32> to vector<32x32xf32>
    %c8_i32_18 = arith.constant 8 : i32
    %34 = vector.broadcast %c8_i32_18 : i32 to vector<32x32xi32>
    %35 = arith.cmpi sge, %22, %34 : vector<32x32xi32>
    %c16_i32 = arith.constant 16 : i32
    %36 = vector.broadcast %c16_i32 : i32 to vector<32x32xi32>
    %37 = arith.cmpi slt, %22, %36 : vector<32x32xi32>
    %38 = arith.andi %35, %37 : vector<32x32xi1>
    %cst_19 = arith.constant 0.000000e+00 : f32
    %39 = vector.broadcast %cst_19 : f32 to vector<32x32xf32>
    %40 = arith.select %38, %15, %39 : vector<32x32xi1>, vector<32x32xf32>
    %cst_20 = arith.constant 0.000000e+00 : f32
    %41 = vector.broadcast %cst_20 : f32 to vector<32x32xf32>
    %42 = arith.select %38, %21, %41 : vector<32x32xi1>, vector<32x32xf32>
    %43 = arith.extui %38 : vector<32x32xi1> to vector<32x32xi32>
    %44 = arith.sitofp %43 : vector<32x32xi32> to vector<32x32xf32>
    %c16_i32_21 = arith.constant 16 : i32
    %45 = vector.broadcast %c16_i32_21 : i32 to vector<32x32xi32>
    %46 = arith.cmpi sge, %22, %45 : vector<32x32xi32>
    %c24_i32 = arith.constant 24 : i32
    %47 = vector.broadcast %c24_i32 : i32 to vector<32x32xi32>
    %48 = arith.cmpi slt, %22, %47 : vector<32x32xi32>
    %49 = arith.andi %46, %48 : vector<32x32xi1>
    %cst_22 = arith.constant 0.000000e+00 : f32
    %50 = vector.broadcast %cst_22 : f32 to vector<32x32xf32>
    %51 = arith.select %49, %15, %50 : vector<32x32xi1>, vector<32x32xf32>
    %cst_23 = arith.constant 0.000000e+00 : f32
    %52 = vector.broadcast %cst_23 : f32 to vector<32x32xf32>
    %53 = arith.select %49, %21, %52 : vector<32x32xi1>, vector<32x32xf32>
    %54 = arith.extui %49 : vector<32x32xi1> to vector<32x32xi32>
    %55 = arith.sitofp %54 : vector<32x32xi32> to vector<32x32xf32>
    %c24_i32_24 = arith.constant 24 : i32
    %56 = vector.broadcast %c24_i32_24 : i32 to vector<32x32xi32>
    %57 = arith.cmpi sge, %22, %56 : vector<32x32xi32>
    %c32_i32 = arith.constant 32 : i32
    %58 = vector.broadcast %c32_i32 : i32 to vector<32x32xi32>
    %59 = arith.cmpi slt, %22, %58 : vector<32x32xi32>
    %60 = arith.andi %57, %59 : vector<32x32xi1>
    %cst_25 = arith.constant 0.000000e+00 : f32
    %61 = vector.broadcast %cst_25 : f32 to vector<32x32xf32>
    %62 = arith.select %60, %15, %61 : vector<32x32xi1>, vector<32x32xf32>
    %cst_26 = arith.constant 0.000000e+00 : f32
    %63 = vector.broadcast %cst_26 : f32 to vector<32x32xf32>
    %64 = arith.select %60, %21, %63 : vector<32x32xi1>, vector<32x32xf32>
    %65 = arith.extui %60 : vector<32x32xi1> to vector<32x32xi32>
    %66 = arith.sitofp %65 : vector<32x32xi32> to vector<32x32xf32>
    %67 = tpu.concatenate %29, %40, %51, %62 in 0 : vector<32x32xf32>, vector<32x32xf32>, vector<32x32xf32>, vector<32x32xf32> -> vector<128x32xf32>
    %68 = tpu.concatenate %31, %42, %53, %64 in 0 : vector<32x32xf32>, vector<32x32xf32>, vector<32x32xf32>, vector<32x32xf32> -> vector<128x32xf32>
    %69 = tpu.concatenate %33, %44, %55, %66 in 0 : vector<32x32xf32>, vector<32x32xf32>, vector<32x32xf32>, vector<32x32xf32> -> vector<128x32xf32>
    %cst_27 = arith.constant dense<0.000000e+00> : vector<32x128xf32>
    %70 = tpu.matmul %9, %67, %cst_27 {dimension_numbers = #tpu.dot_dimension_numbers<[1], [1], [0], [0], [0, 0, 1, 0], [], []>} : vector<32x32xf32>, vector<128x32xf32>, vector<32x128xf32> -> vector<32x128xf32>
    %71 = tpu.iota {dimensions = array<i32: 0>} : vector<32x128xi32>
    %cst_28 = arith.constant 0.000000e+00 : f32
    %72 = vector.broadcast %cst_28 : f32 to vector<32x128xf32>
    %c16_i32_29 = arith.constant 16 : i32
    %73 = vector.broadcast %c16_i32_29 : i32 to vector<32x128xi32>
    %74 = arith.cmpi sge, %71, %73 : vector<32x128xi32>
    %75 = arith.extui %74 : vector<32x128xi1> to vector<32x128xi32>
    %76 = arith.sitofp %75 : vector<32x128xi32> to vector<32x128xf32>
    %77 = arith.addf %72, %76 : vector<32x128xf32>
    %78 = vector.broadcast %2 : vector<1x128xf32> to vector<32x128xf32>
    %79 = arith.cmpf oeq, %77, %78 : vector<32x128xf32>
    %cst_30 = arith.constant -1.000000e+09 : f32
    %80 = vector.shape_cast %1 : vector<1x128xf32> to vector<1x128xf32>
    %81 = vector.broadcast %80 : vector<1x128xf32> to vector<32x128xf32>
    %82 = vector.broadcast %cst_30 : f32 to vector<32x128xf32>
    %83 = arith.select %79, %81, %82 : vector<32x128xi1>, vector<32x128xf32>
    %84 = arith.addf %70, %83 : vector<32x128xf32>
    %cst_31 = arith.constant dense<0xFF800000> : vector<32xf32>
    %85 = vector.multi_reduction <maximumf>, %84, %cst_31 [1] : vector<32x128xf32> to vector<32xf32>
    %86 = vector.shape_cast %85 : vector<32xf32> to vector<32x1xf32>
    %87 = vector.broadcast %86 : vector<32x1xf32> to vector<32x128xf32>
    %88 = arith.subf %84, %87 : vector<32x128xf32>
    %89 = math.exp %88 : vector<32x128xf32>
    %cst_32 = arith.constant dense<0.000000e+00> : vector<32x32xf32>
    %90 = tpu.matmul %89, %69, %cst_32 {dimension_numbers = #tpu.dot_dimension_numbers<[1], [0], [0], [1], [0, 0, 1, 1], [], []>} : vector<32x128xf32>, vector<128x32xf32>, vector<32x32xf32> -> vector<32x32xf32>
    %cst_33 = arith.constant dense<0.000000e+00> : vector<32x32xf32>
    %91 = tpu.matmul %89, %68, %cst_33 {dimension_numbers = #tpu.dot_dimension_numbers<[1], [0], [0], [1], [0, 0, 1, 1], [], []>} : vector<32x128xf32>, vector<128x32xf32>, vector<32x32xf32> -> vector<32x32xf32>
    %92 = tpu.reciprocal %90 {approx = true} : vector<32x32xf32> -> vector<32x32xf32>
    %93 = arith.mulf %91, %92 : vector<32x32xf32>
    %c3 = arith.constant 3 : index
    %c0_34 = arith.constant 0 : index
    %c0_35 = arith.constant 0 : index
    %94 = vector.load %arg2[%c3, %c0_34, %c0_35] : memref<4x32x32xf32, #tpu.memory_space<vmem>>, vector<1x32x32xf32>
    %95 = vector.shape_cast %94 : vector<1x32x32xf32> to vector<32x32xf32>
    %cst_36 = arith.constant dense<0.000000e+00> : vector<32x32xf32>
    %96 = tpu.matmul %93, %95, %cst_36 {dimension_numbers = #tpu.dot_dimension_numbers<[1], [0], [0], [1], [0, 0, 1, 1], [], []>} : vector<32x32xf32>, vector<32x32xf32>, vector<32x32xf32> -> vector<32x32xf32>
    %97 = vector.extract_strided_slice %3 {offsets = [3, 0], sizes = [1, 32], strides = [1, 1]} : vector<8x32xf32> to vector<1x32xf32>
    %98 = vector.broadcast %97 : vector<1x32xf32> to vector<32x32xf32>
    %99 = arith.addf %96, %98 : vector<32x32xf32>
    %100 = arith.addf %99, %0 : vector<32x32xf32>
    %cst_37 = arith.constant dense<0.000000e+00> : vector<32xf32>
    %101 = vector.multi_reduction <add>, %100, %cst_37 [1] : vector<32x32xf32> to vector<32xf32>
    %102 = vector.shape_cast %101 : vector<32xf32> to vector<32x1xf32>
    %cst_38 = arith.constant 3.200000e+01 : f32
    %103 = vector.broadcast %cst_38 : f32 to vector<32x1xf32>
    %104 = arith.divf %102, %103 : vector<32x1xf32>
    %105 = vector.broadcast %104 : vector<32x1xf32> to vector<32x32xf32>
    %106 = arith.subf %100, %105 : vector<32x32xf32>
    %107 = arith.mulf %106, %106 : vector<32x32xf32>
    %cst_39 = arith.constant dense<0.000000e+00> : vector<32xf32>
    %108 = vector.multi_reduction <add>, %107, %cst_39 [1] : vector<32x32xf32> to vector<32xf32>
    %109 = vector.shape_cast %108 : vector<32xf32> to vector<32x1xf32>
    %cst_40 = arith.constant 3.200000e+01 : f32
    %110 = vector.broadcast %cst_40 : f32 to vector<32x1xf32>
    %111 = arith.divf %109, %110 : vector<32x1xf32>
    %112 = vector.broadcast %104 : vector<32x1xf32> to vector<32x32xf32>
    %113 = arith.subf %100, %112 : vector<32x32xf32>
    %cst_41 = arith.constant 9.99999996E-13 : f32
    %114 = vector.broadcast %cst_41 : f32 to vector<32x1xf32>
    %115 = arith.addf %111, %114 : vector<32x1xf32>
    %116 = math.rsqrt %115 : vector<32x1xf32>
    %117 = vector.broadcast %116 : vector<32x1xf32> to vector<32x32xf32>
    %118 = arith.mulf %113, %117 : vector<32x32xf32>
    %119 = vector.extract_strided_slice %3 {offsets = [4, 0], sizes = [1, 32], strides = [1, 1]} : vector<8x32xf32> to vector<1x32xf32>
    %120 = vector.broadcast %119 : vector<1x32xf32> to vector<32x32xf32>
    %121 = arith.mulf %118, %120 : vector<32x32xf32>
    %122 = vector.extract_strided_slice %3 {offsets = [5, 0], sizes = [1, 32], strides = [1, 1]} : vector<8x32xf32> to vector<1x32xf32>
    %123 = vector.broadcast %122 : vector<1x32xf32> to vector<32x32xf32>
    %124 = arith.addf %121, %123 : vector<32x32xf32>
    %c0_42 = arith.constant 0 : index
    %c0_43 = arith.constant 0 : index
    %125 = vector.load %arg4[%c0_42, %c0_43] : memref<32x32xf32, #tpu.memory_space<vmem>>, vector<32x32xf32>
    tpu.vector_store %arg4[%c0_42, %c0_43], %124 {strides = array<i32>} : memref<32x32xf32, #tpu.memory_space<vmem>>, vector<32x32xf32>,
    return
  }
}

</mosaic_0001>

<bundles_post_ra>
// kernel: bert_attention.1
= control target key start
LH: loop header
LB: loop body
LE: loop exit
PB: predicated region body
PF: predicated region fallthrough
CT: control target
= control target key end

     0   :  { %9 = vsyncpa [#allocation3], 0  ;;  %s1344_s15 = smov [#allocation2]   ;;  %s1703_s0 = inlined_call_operand.vmem [shape: f32[32,32], index: 0, kind: input, shape index: {}, may-alias: {0,4}]   ;;  %s1704_s1 = inlined_call_operand.vmem [shape: f32[2,128], index: 1, kind: input, shape index: {}]   ;;  %s1705_s2 = inlined_call_operand.hbm [shape: f32[4,32,32], index: 2, kind: input, shape index: {}]   ;;  %s1706_s3 = inlined_call_operand.vmem [shape: f32[8,32], index: 3, kind: input, shape index: {}]   ;;  %s1707_s4 = inlined_call_operand.vmem [shape: f32[32,32], index: 4, kind: output, shape index: {}, may-alias: {0,4}]  }
   0x1   :  { %s19_s16 = sshll.u32 %s1344_s15, 4  ;;  %s20_s16 = int_to_ptr.vmem [resolvable:$true] %s19_s16 }
   0x2   :  { %s1330_s17 = scalar_lea.vmem %s20_s16, 2048  ;;  %p1335_p1 = scmp.lt.s32.totalorder %s20_s16, %s20_s16 }
   0x3   :  { %p1331_p0 = scmp.ne.s32.totalorder %s20_s16, %s1330_s17  ;;  %p1336_p2 = scmp.lt.s32.totalorder %s1330_s17, %s1330_s17 }
   0x5   :  { %p1337_p3 = por %p1336_p2, %p1335_p1 }
   0x7   :  { %p1338_p4 = pnand %p1337_p3, %p1331_p0 }
   0x9   :  { %1341 = shalt.err (!%p1338_p4)
}
   0xa   :  { %s1345_s18 = smov 128   ;;  %s1346_s19 = smov 8  }
   0xb   :  { %25 = dma.hbm_to_vmem [thread:$0]  %s1705_s2, 2048, %s20_s16, [#allocation3], %s1345_s18, %s1345_s18, %s1346_s19  }
   0xc   :  { %1342 = dma.done.wait [#allocation3], 2048  }
   0xd   :  { %1343 = vsyncadd [#allocation3], 4294965248  ;;  %vm46_vm0 = vcmask 261120   ;;  %v148_v0 = vld [vmem:[#allocation2 + $0x38] sm:$0xff]  ;;  %v147_v1 = vld [vmem:[#allocation2 + $0x30] sm:$0xff]  ;;  %v42_v16 = vlaneseq  ;;  %v1347_v59 = vmov 1.0  }
   0xe   :  { %1138 = vmatprep.subr.mxu1 %v148_v0  ;;  %v1379_v2 = vld [vmem:[%s1703_s0] sm:$0xff]  ;;  %v146_v3 = vld [vmem:[#allocation2 + $0x28] sm:$0xff]  ;;  %v41_v4 = vld [vmem:[#allocation2 + $0x18] sm:$0xff] }
   0xf   :  { %1139 = vmatpush3.msra.mxu1 %v148_v0  ;;  %1146 = vmatprep.mubr.msk.f32.mxu1 %vm46_vm0, %v1379_v2  ;;  %v40_v5 = vld [vmem:[#allocation2 + $0x10] sm:$0xff]  ;;  %v145_v6 = vld [vmem:[#allocation2 + $0x20] sm:$0xff]  ;;  %v39_v7 = vld [vmem:[#allocation2 + $0x8] sm:$0xff]  ;;  %v1420_v17 = vshrl.u32 %v42_v16, 7  ;;  %v1429_v21 = vand.u32 127, %v42_v16 }
  0x10   :  { %1140 = vmatprep.subr.mxu1 %v147_v1  ;;  %1124 = vmatprep.subr.mxu0 %v41_v4  ;;  %v1386_v8 = vld [vmem:[%s1703_s0 + $0x8] sm:$0xff]  ;;  %v38_v9 = vld [vmem:[#allocation2] sm:$0xff]  ;;  %v1391_v10 = vld [vmem:[%s1703_s0 + $0x10] sm:$0xff] }
  0x11   :  { %1141 = vmatpush3.msra.mxu1 %v147_v1  ;;  %1125 = vmatpush3.msra.mxu0 %v41_v4  ;;  %v1400_v11 = vld [vmem:[%s1703_s0 + $0x18] sm:$0xff]  ;;  %v241_v13 = vld [vmem:[#allocation2 + $0x50] sm:$0xff]  ;;  %v240_v14 = vld [vmem:[#allocation2 + $0x48] sm:$0xff]  ;;  %v44_v18 = vsub.s32 0, %v1420_v17  ;;  %v151_v20 = vsub.s32 1, %v1420_v17  ;;  %vm373_vm1 = vcmp.ge.s32.totalorder %v1429_v21, 24 }
  0x12   :  { %1142 = vmatprep.subr.mxu1 %v146_v3  ;;  %1126 = vmatprep.subr.mxu0 %v40_v5  ;;  %v242_v12 = vld [vmem:[#allocation2 + $0x58] sm:$0xff]  ;;  %v239_v15 = vld [vmem:[#allocation2 + $0x40] sm:$0xff]  ;;  %vm374_vm2 = vcmp.lt.s32.totalorder %v1429_v21, 32  ;;  %vm360_vm4 = vcmp.ge.s32.totalorder %v1429_v21, 16  ;;  %vm361_vm5 = vcmp.lt.s32.totalorder %v1429_v21, 24  ;;  %vm347_vm7 = vcmp.ge.s32.totalorder %v1429_v21, 8 }
  0x13   :  { %1143 = vmatpush3.msra.mxu1 %v146_v3  ;;  %1127 = vmatpush3.msra.mxu0 %v40_v5  ;;  %v1426_v19 = vld [vmem:[%s1706_s3] sm:$0xff]  ;;  %vm1440_vm3 = vmand %vm373_vm1, %vm374_vm2  ;;  %vm348_vm8 = vcmp.lt.s32.totalorder %v1429_v21, 16  ;;  %vm335_vm10 = vcmp.lt.s32.totalorder %v1429_v21, 8  ;;  %v770_v31 = vld [vmem:[#allocation2 + $0x78] sm:$0xff] }
  0x14   :  { %1144 = vmatprep.subr.mxu1 %v145_v6  ;;  %1128 = vmatprep.subr.mxu0 %v39_v7  ;;  %v1432_v23 = vrot.slane %v1426_v19, %v44_v18  ;;  %v152_v25 = vrot.slane %v1426_v19, %v151_v20  ;;  %vm1463_vm6 = vmand %vm360_vm4, %vm361_vm5  ;;  %v970_v60 = vld [vmem:[%s1704_s1 + $0x1] ss:$0 sm:$0xff]  ;;  %v975_v61 = vld [vmem:[%s1704_s1] ss:$0 sm:$0xff] }
  0x15   :  { %1145 = vmatpush3.msra.mxu1 %v145_v6  ;;  %1129 = vmatpush3.msra.mxu0 %v39_v7  ;;  %vm1485_vm9 = vmand %vm347_vm7, %vm348_vm8  ;;  %vm971_vm11 = vcmp.eq.f32.partialorder %v970_v60, 0.0  ;;  %vm973_vm12 = vcmp.eq.f32.partialorder %v970_v60, 1.0  ;;  %v769_v41 = vld [vmem:[#allocation2 + $0x70] sm:$0xff]  ;;  %v773_v60 = vsub.s32 3, %v1420_v17 }
  0x16   :  { %1147 = vmatmul.mubr.msk.f32.vlgmr.msra.gmra.mxu1 %vm46_vm0, %v1386_v8  ;;  %1130 = vmatprep.subr.mxu0 %v38_v9  ;;  %v419_v63 = vsel %vm971_vm11, %v975_v61, -1e+09  ;;  %v421_v3 = vsel %vm973_vm12, %v975_v61, -1e+09 }
  0x17   :  { %1149 = vmatprep.mubr.msk.f32.mxu1 %vm46_vm0, %v1391_v10  ;;  %1131 = vmatpush3.msra.mxu0 %v38_v9  ;;  %v774_v61 = vrot.slane %v1426_v19, %v773_v60 }
  0x18   :  { %1132 = vmatprep.mubr.msk.f32.mxu0 %vm46_vm0, %v1379_v2  ;;  %1152 = vmatprep.subr.mxu0 %v242_v12 }
  0x19   :  { %1133 = vmatmul.mubr.msk.f32.vlgmr.msra.gmra.mxu0 %vm46_vm0, %v1386_v8 }
  0x1a   :  { %1150 = vmatmul.mubr.msk.f32.gmra.mxu1 %vm46_vm0, %v1400_v11  ;;  %1135 = vmatprep.mubr.msk.f32.mxu0 %vm46_vm0, %v1391_v10 }
  0x1b   :  { %1153 = vmatpush3.msra.mxu0 %v242_v12  ;;  %v245_v12 = vsub.s32 2, %v1420_v17 }
  0x1c   :  { %1154 = vmatprep.subr.mxu0 %v241_v13 }
  0x1d   :  { %1136 = vmatmul.mubr.msk.f32.gmra.mxu0 %vm46_vm0, %v1400_v11 }
  0x1e   :  { %1160 = vmatprep.mubr.msk.f32.mxu0 %vm46_vm0, %v1379_v2  ;;  %1155 = vmatpush3.msra.mxu0 %v241_v13 }
  0x1f   :  { %1156 = vmatprep.subr.mxu0 %v240_v14 }
  0x20   :  { %1157 = vmatpush3.msra.mxu0 %v240_v14  ;;  %v246_v14 = vrot.slane %v1426_v19, %v245_v12 }
  0x21   :  { %1158 = vmatprep.subr.mxu0 %v239_v15 }
  0x22   :  { %1159 = vmatpush3.msra.mxu0 %v239_v15 }
  0x23   :  { %1161 = vmatmul.mubr.msk.f32.vlgmr.msra.gmra.mxu0 %vm46_vm0, %v1386_v8  ;;  %1204 = vmatprep.subr.msk.mxu0 %vm1440_vm3, %v1347_v59 }
  0x24   :  { %1163 = vmatprep.mubr.msk.f32.mxu0 %vm46_vm0, %v1391_v10  ;;  %1205 = vmatpush3.msk.msra.mxu0 %vm1440_vm3, %v1347_v59 }
  0x25   :  { %1206 = vmatprep.subr.msk.mxu0 %vm1440_vm3, %v1347_v59 }
  0x26   :  { %1207 = vmatpush3.msk.msra.mxu0 %vm1440_vm3, %v1347_v59 }
  0x27   :  { %1164 = vmatmul.mubr.msk.f32.gmra.mxu0 %vm46_vm0, %v1400_v11  ;;  %1208 = vmatprep.subr.msk.mxu0 %vm1440_vm3, %v1347_v59 }
  0x28   :  { %1209 = vmatpush3.msk.msra.mxu0 %vm1440_vm3, %v1347_v59 }
  0x29   :  { %1210 = vmatprep.subr.msk.mxu0 %vm1440_vm3, %v1347_v59 }
  0x2a   :  { %1211 = vmatpush3.msk.msra.mxu0 %vm1440_vm3, %v1347_v59 }
  0x2b   :  { %1212 = vmatprep.subr.msk.mxu0 %vm1463_vm6, %v1347_v59 }
  0x2c   :  { %1213 = vmatpush3.msk.msra.mxu0 %vm1463_vm6, %v1347_v59 }
  0x2d   :  { %1214 = vmatprep.subr.msk.mxu0 %vm1463_vm6, %v1347_v59 }
  0x2e   :  { %1215 = vmatpush3.msk.msra.mxu0 %vm1463_vm6, %v1347_v59 }
  0x2f   :  { %1216 = vmatprep.subr.msk.mxu0 %vm1463_vm6, %v1347_v59 }
  0x30   :  { %1217 = vmatpush3.msk.msra.mxu0 %vm1463_vm6, %v1347_v59 }
  0x31   :  { %1218 = vmatprep.subr.msk.mxu0 %vm1463_vm6, %v1347_v59 }
  0x32   :  { %1219 = vmatpush3.msk.msra.mxu0 %vm1463_vm6, %v1347_v59 }
  0x33   :  { %1220 = vmatprep.subr.msk.mxu0 %vm1485_vm9, %v1347_v59 }
  0x34   :  { %1221 = vmatpush3.msk.msra.mxu0 %vm1485_vm9, %v1347_v59 }
  0x35   :  { %1222 = vmatprep.subr.msk.mxu0 %vm1485_vm9, %v1347_v59 }
  0x36   :  { %1223 = vmatpush3.msk.msra.mxu0 %vm1485_vm9, %v1347_v59 }
  0x37   :  { %1224 = vmatprep.subr.msk.mxu0 %vm1485_vm9, %v1347_v59 }
  0x38   :  { %1225 = vmatpush3.msk.msra.mxu0 %vm1485_vm9, %v1347_v59 }
  0x39   :  { %1226 = vmatprep.subr.msk.mxu0 %vm1485_vm9, %v1347_v59 }
  0x3a   :  { %1227 = vmatpush3.msk.msra.mxu0 %vm1485_vm9, %v1347_v59 }
  0x3b   :  { %1228 = vmatprep.subr.msk.mxu0 %vm335_vm10, %v1347_v59 }
  0x3c   :  { %1229 = vmatpush3.msk.msra.mxu0 %vm335_vm10, %v1347_v59 }
  0x3d   :  { %1230 = vmatprep.subr.msk.mxu0 %vm335_vm10, %v1347_v59 }
  0x3e   :  { %1231 = vmatpush3.msk.msra.mxu0 %vm335_vm10, %v1347_v59 }
  0x3f   :  { %1232 = vmatprep.subr.msk.mxu0 %vm335_vm10, %v1347_v59 }
  0x40   :  { %1233 = vmatpush3.msk.msra.mxu0 %vm335_vm10, %v1347_v59 }
  0x41   :  { %1234 = vmatprep.subr.msk.mxu0 %vm335_vm10, %v1347_v59 }
  0x42   :  { %1235 = vmatpush3.msk.msra.mxu0 %vm335_vm10, %v1347_v59 }
  0xd6   :  { %v1148_v22 = vpop.f32.mrf.mxu1 }
  0xd7   :  { %v225_v36 = vadd.f32 %v1148_v22, %v152_v25 }
  0xd8   :  { %v219_v24 = vpop.f32.mrf.mxu1 }
  0xd9   :  { %v1134_v26 = vpop.f32.mrf.mxu0  ;;  %v220_v38 = vadd.f32 %v219_v24, %v152_v25  ;;  %v377_v39 = vsel %vm1440_vm3, %v225_v36, 0.0  ;;  %v364_v44 = vsel %vm1463_vm6, %v225_v36, 0.0  ;;  %v351_v49 = vsel %vm1485_vm9, %v225_v36, 0.0 }
  0xda   :  { %v1151_v27 = vpop.f32.mrf.mxu1  ;;  %v1438_v28 = vadd.f32 %v1134_v26, %v1432_v23  ;;  %v338_v53 = vsel %vm335_vm10, %v225_v36, 0.0 }
  0xdb   :  { %v235_v29 = vadd.f32 %v1151_v27, %v152_v25  ;;  %v125_v30 = vpop.f32.mrf.mxu0  ;;  %v376_v40 = vsel %vm1440_vm3, %v220_v38, 0.0  ;;  %v363_v45 = vsel %vm1463_vm6, %v220_v38, 0.0  ;;  %v350_v50 = vsel %vm1485_vm9, %v220_v38, 0.0 }
  0xdc   :  { %v229_v32 = vpop.f32.mrf.mxu1  ;;  %v126_v33 = vadd.f32 %v125_v30, %v1432_v23  ;;  %v337_v55 = vsel %vm335_vm10, %v220_v38, 0.0 }
  0xdd   :  { %v230_v34 = vadd.f32 %v229_v32, %v152_v25  ;;  %v379_v35 = vsel %vm1440_vm3, %v235_v29, 0.0  ;;  %v366_v42 = vsel %vm1463_vm6, %v235_v29, 0.0  ;;  %v353_v47 = vsel %vm1485_vm9, %v235_v29, 0.0  ;;  %v1137_v54 = vpop.f32.mrf.mxu0 }
  0xde   :  { %1166 = vmatprep.subr.msk.mxu1 %vm46_vm0, %v379_v35  ;;  %1198 = vmatprep.mubr.msk.f32.mxu1 %vm46_vm0, %v126_v33  ;;  %v340_v51 = vsel %vm335_vm10, %v235_v29, 0.0  ;;  %v141_v58 = vadd.f32 %v1137_v54, %v1432_v23 }
  0xdf   :  { %1167 = vmatpush3.xpose.msk.msra.mxu1 %vm46_vm0, %v379_v35  ;;  %v378_v37 = vsel %vm1440_vm3, %v230_v34, 0.0  ;;  %v365_v43 = vsel %vm1463_vm6, %v230_v34, 0.0  ;;  %v352_v48 = vsel %vm1485_vm9, %v230_v34, 0.0  ;;  %v339_v52 = vsel %vm335_vm10, %v230_v34, 0.0  ;;  %v135_v56 = vpop.f32.mrf.mxu0 }
  0xe0   :  { %1168 = vmatprep.subr.msk.mxu1 %vm46_vm0, %v378_v37  ;;  %v136_v57 = vadd.f32 %v135_v56, %v1432_v23 }
  0xe3   :  { %1169 = vmatpush3.xpose.msk.msra.mxu1 %vm46_vm0, %v378_v37  ;;  %v1162_v13 = vpop.f32.mrf.mxu0 }
  0xe4   :  { %1170 = vmatprep.subr.msk.mxu1 %vm46_vm0, %v377_v39  ;;  %v319_v16 = vadd.f32 %v1162_v13, %v246_v14 }
  0xe5   :  { %v313_v15 = vpop.f32.mrf.mxu0 }
  0xe6   :  { %v314_v18 = vadd.f32 %v313_v15, %v246_v14 }
  0xe7   :  { %1171 = vmatpush3.xpose.msk.msra.mxu1 %vm46_vm0, %v377_v39  ;;  %v1165_v20 = vpop.f32.mrf.mxu0 }
  0xe8   :  { %1172 = vmatprep.subr.msk.mxu1 %vm46_vm0, %v376_v40  ;;  %v329_v22 = vadd.f32 %v1165_v20, %v246_v14 }
  0xe9   :  { %v323_v37 = vpop.f32.mrf.mxu0 }
  0xea   :  { %1242 = vmatprep.subr.msk.mxu0 %vm1440_vm3, %v329_v22 }
  0xeb   :  { %1173 = vmatpush3.xpose.msk.msra.mxu1 %vm46_vm0, %v376_v40  ;;  %v324_v40 = vadd.f32 %v323_v37, %v246_v14 }
  0xec   :  { %1174 = vmatprep.subr.msk.mxu1 %vm46_vm0, %v366_v42 }
  0xef   :  { %1175 = vmatpush3.xpose.msk.msra.mxu1 %vm46_vm0, %v366_v42 }
  0xf0   :  { %1176 = vmatprep.subr.msk.mxu1 %vm46_vm0, %v365_v43 }
  0xf3   :  { %1177 = vmatpush3.xpose.msk.msra.mxu1 %vm46_vm0, %v365_v43  ;;  %v768_v43 = vld [vmem:[#allocation2 + $0x68] sm:$0xff] }
  0xf4   :  { %1178 = vmatprep.subr.msk.mxu1 %vm46_vm0, %v364_v44 }
  0xf7   :  { %1179 = vmatpush3.xpose.msk.msra.mxu1 %vm46_vm0, %v364_v44  ;;  %v767_v44 = vld [vmem:[#allocation2 + $0x60] sm:$0xff] }
  0xf8   :  { %1180 = vmatprep.subr.msk.mxu1 %vm46_vm0, %v363_v45 }
  0xfb   :  { %1181 = vmatpush3.xpose.msk.msra.mxu1 %vm46_vm0, %v363_v45 }
  0xfc   :  { %1182 = vmatprep.subr.msk.mxu1 %vm46_vm0, %v353_v47 }
  0xff   :  { %1183 = vmatpush3.xpose.msk.msra.mxu1 %vm46_vm0, %v353_v47 }
 0x100   :  { %1184 = vmatprep.subr.msk.mxu1 %vm46_vm0, %v352_v48 }
 0x103   :  { %1185 = vmatpush3.xpose.msk.msra.mxu1 %vm46_vm0, %v352_v48 }
 0x104   :  { %1186 = vmatprep.subr.msk.mxu1 %vm46_vm0, %v351_v49 }
 0x107   :  { %1187 = vmatpush3.xpose.msk.msra.mxu1 %vm46_vm0, %v351_v49 }
 0x108   :  { %1188 = vmatprep.subr.msk.mxu1 %vm46_vm0, %v350_v50 }
 0x10b   :  { %1189 = vmatpush3.xpose.msk.msra.mxu1 %vm46_vm0, %v350_v50 }
 0x10c   :  { %1190 = vmatprep.subr.msk.mxu1 %vm46_vm0, %v340_v51 }
 0x10f   :  { %1191 = vmatpush3.xpose.msk.msra.mxu1 %vm46_vm0, %v340_v51 }
 0x110   :  { %1192 = vmatprep.subr.msk.mxu1 %vm46_vm0, %v339_v52 }
 0x113   :  { %1193 = vmatpush3.xpose.msk.msra.mxu1 %vm46_vm0, %v339_v52 }
 0x114   :  { %1194 = vmatprep.subr.msk.mxu1 %vm46_vm0, %v338_v53 }
 0x117   :  { %1195 = vmatpush3.xpose.msk.msra.mxu1 %vm46_vm0, %v338_v53 }
 0x118   :  { %1196 = vmatprep.subr.msk.mxu1 %vm46_vm0, %v337_v55 }
 0x11b   :  { %1197 = vmatpush3.xpose.msk.msra.mxu1 %vm46_vm0, %v337_v55 }
 0x11c   :  { %1280 = vmatprep.subr.mxu1 %v770_v31 }
 0x11e   :  { %1199 = vmatmul.mubr.msk.f32.vlgmr.msra.gmra.mxu1 %vm46_vm0, %v1438_v28 }
 0x11f   :  { %1201 = vmatprep.mubr.msk.f32.mxu1 %vm46_vm0, %v136_v57  ;;  %1281 = vmatpush3.msra.mxu1 %v770_v31 }
 0x120   :  { %1282 = vmatprep.subr.mxu1 %v769_v41 }
 0x121   :  { %1283 = vmatpush3.msra.mxu1 %v769_v41 }
 0x122   :  { %1202 = vmatmul.mubr.msk.f32.gmra.mxu1 %vm46_vm0, %v141_v58  ;;  %1284 = vmatprep.subr.mxu1 %v768_v43 }
 0x123   :  { %1285 = vmatpush3.msra.mxu1 %v768_v43 }
 0x124   :  { %1286 = vmatprep.subr.mxu1 %v767_v44 }
 0x125   :  { %1287 = vmatpush3.msra.mxu1 %v767_v44 }
 0x1de   :  { %v1200_v62 = vpop.f32.mrf.mxu1 }
 0x1df   :  { %v555_v6 = vadd.f32 %v1200_v62, %v419_v63 }
 0x1e0   :  { %v549_v0 = vpop.f32.mrf.mxu1 }
 0x1e1   :  { %v550_v1 = vadd.f32 %v549_v0, %v419_v63 }
 0x1e2   :  { %v1203_v4 = vpop.f32.mrf.mxu1 }
 0x1e3   :  { %568 = vmax.xlane.f32.xlu0 %v550_v1  ;;  %v565_v9 = vadd.f32 %v1203_v4, %v421_v3 }
 0x1e4   :  { %v559_v5 = vpop.f32.mrf.mxu1 }
 0x1e5   :  { %v560_v7 = vadd.f32 %v559_v5, %v421_v3 }
 0x1e7   :  { %572 = vmax.xlane.f32.xlu1 %v560_v7  ;;  %570 = vmax.xlane.f32.xlu0 %v555_v6 }
 0x1eb   :  { %574 = vmax.xlane.f32.xlu1 %v565_v9 }
 0x26c   :  { %v569_v23 = vpop.xlane.xlu0 %568 }
 0x26d   :  { %v576_v24 = vsub.f32 %v550_v1, %v569_v23 }
 0x26f   :  { %v580_v25 = vmul.f32 1.442695, %v576_v24 }
 0x270   :  { %v573_v26 = vpop.xlane.xlu1 %572  ;;  %v571_v27 = vpop.xlane.xlu0 %570 }
 0x271   :  { %1298 = vpow2.f32 %v580_v25  ;;  %v578_v28 = vsub.f32 %v560_v7, %v573_v26  ;;  %v577_v29 = vsub.f32 %v555_v6, %v571_v27 }
 0x273   :  { %v584_v30 = vmul.f32 1.442695, %v578_v28  ;;  %v582_v32 = vmul.f32 1.442695, %v577_v29 }
 0x274   :  { %v575_v33 = vpop.xlane.xlu1 %574 }
 0x275   :  { %1300 = vpow2.f32 %v584_v30  ;;  %v579_v34 = vsub.f32 %v565_v9, %v575_v33 }
 0x276   :  { %1302 = vpow2.f32 %v582_v32 }
 0x277   :  { %v586_v35 = vmul.f32 1.442695, %v579_v34 }
 0x279   :  { %1304 = vpow2.f32 %v586_v35 }
 0x27e   :  { %v1299_v36 = vpop.eup %1298 }
 0x27f   :  { %1236 = vmatprep.mubr.f32.mxu0 %v1299_v36 }
 0x282   :  { %v1301_v38 = vpop.eup %1300 }
 0x283   :  { %v1303_v39 = vpop.eup %1302 }
 0x284   :  { %1237 = vmatmul.mubr.f32.vlgmr.msra.gmra.mxu0 %v1303_v39 }
 0x285   :  { %1243 = vmatpush3.msk.msra.mxu0 %vm1440_vm3, %v329_v22  ;;  %1239 = vmatprep.mubr.f32.mxu0 %v1301_v38 }
 0x286   :  { %v1305_v42 = vpop.eup %1304  ;;  %1244 = vmatprep.subr.msk.mxu0 %vm1440_vm3, %v324_v40 }
 0x287   :  { %1245 = vmatpush3.msk.msra.mxu0 %vm1440_vm3, %v324_v40 }
 0x288   :  { %1246 = vmatprep.subr.msk.mxu0 %vm1440_vm3, %v319_v16  ;;  %1240 = vmatmul.mubr.f32.gmra.mxu0 %v1305_v42 }
 0x289   :  { %1247 = vmatpush3.msk.msra.mxu0 %vm1440_vm3, %v319_v16  ;;  %1274 = vmatprep.mubr.f32.mxu0 %v1299_v36 }
 0x28a   :  { %1248 = vmatprep.subr.msk.mxu0 %vm1440_vm3, %v314_v18 }
 0x28b   :  { %1249 = vmatpush3.msk.msra.mxu0 %vm1440_vm3, %v314_v18 }
 0x28c   :  { %1250 = vmatprep.subr.msk.mxu0 %vm1463_vm6, %v329_v22 }
 0x28d   :  { %1251 = vmatpush3.msk.msra.mxu0 %vm1463_vm6, %v329_v22 }
 0x28e   :  { %1252 = vmatprep.subr.msk.mxu0 %vm1463_vm6, %v324_v40 }
 0x28f   :  { %1253 = vmatpush3.msk.msra.mxu0 %vm1463_vm6, %v324_v40 }
 0x290   :  { %1254 = vmatprep.subr.msk.mxu0 %vm1463_vm6, %v319_v16 }
 0x291   :  { %1255 = vmatpush3.msk.msra.mxu0 %vm1463_vm6, %v319_v16 }
 0x292   :  { %1256 = vmatprep.subr.msk.mxu0 %vm1463_vm6, %v314_v18 }
 0x293   :  { %1257 = vmatpush3.msk.msra.mxu0 %vm1463_vm6, %v314_v18 }
 0x294   :  { %1258 = vmatprep.subr.msk.mxu0 %vm1485_vm9, %v329_v22 }
 0x295   :  { %1259 = vmatpush3.msk.msra.mxu0 %vm1485_vm9, %v329_v22 }
 0x296   :  { %1260 = vmatprep.subr.msk.mxu0 %vm1485_vm9, %v324_v40 }
 0x297   :  { %1261 = vmatpush3.msk.msra.mxu0 %vm1485_vm9, %v324_v40 }
 0x298   :  { %1262 = vmatprep.subr.msk.mxu0 %vm1485_vm9, %v319_v16 }
 0x299   :  { %1263 = vmatpush3.msk.msra.mxu0 %vm1485_vm9, %v319_v16 }
 0x29a   :  { %1264 = vmatprep.subr.msk.mxu0 %vm1485_vm9, %v314_v18 }
 0x29b   :  { %1265 = vmatpush3.msk.msra.mxu0 %vm1485_vm9, %v314_v18 }
 0x29c   :  { %1266 = vmatprep.subr.msk.mxu0 %vm335_vm10, %v329_v22 }
 0x29d   :  { %1267 = vmatpush3.msk.msra.mxu0 %vm335_vm10, %v329_v22 }
 0x29e   :  { %1268 = vmatprep.subr.msk.mxu0 %vm335_vm10, %v324_v40 }
 0x29f   :  { %1269 = vmatpush3.msk.msra.mxu0 %vm335_vm10, %v324_v40 }
 0x2a0   :  { %1270 = vmatprep.subr.msk.mxu0 %vm335_vm10, %v319_v16 }
 0x2a1   :  { %1271 = vmatpush3.msk.msra.mxu0 %vm335_vm10, %v319_v16 }
 0x2a2   :  { %1272 = vmatprep.subr.msk.mxu0 %vm335_vm10, %v314_v18 }
 0x2a3   :  { %1273 = vmatpush3.msk.msra.mxu0 %vm335_vm10, %v314_v18 }
 0x2a4   :  { %1275 = vmatmul.mubr.f32.vlgmr.msra.gmra.mxu0 %v1303_v39 }
 0x2a5   :  { %1277 = vmatprep.mubr.f32.mxu0 %v1301_v38 }
 0x2a8   :  { %1278 = vmatmul.mubr.f32.gmra.mxu0 %v1305_v42 }
 0x344   :  { %v1238_v45 = vpop.f32.mrf.mxu0 }
 0x346   :  { %v654_v46 = vpop.f32.mrf.mxu0 }
 0x347   :  { %1306 = vrcp.f32 %v654_v46 }
 0x348   :  { %v1241_v47 = vpop.f32.mrf.mxu0  ;;  %1308 = vrcp.f32 %v1238_v45 }
 0x34a   :  { %v664_v21 = vpop.f32.mrf.mxu0 }
 0x34b   :  { %1310 = vrcp.f32 %v664_v21 }
 0x34c   :  { %1312 = vrcp.f32 %v1241_v47 }
 0x354   :  { %v1307_v49 = vpop.eup %1306 }
 0x355   :  { %v1309_v51 = vpop.eup %1308 }
 0x358   :  { %v1311_v55 = vpop.eup %1310 }
 0x359   :  { %v1313_v57 = vpop.eup %1312 }
 0x364   :  { %v1276_v48 = vpop.f32.mrf.mxu0 }
 0x365   :  { %v763_v53 = vmul.f32 %v1309_v51, %v1276_v48  ;;  %v931_v48 = vsub.s32 4, %v1420_v17 }
 0x366   :  { %v739_v50 = vpop.f32.mrf.mxu0 }
 0x367   :  { %v762_v52 = vmul.f32 %v1307_v49, %v739_v50  ;;  %v939_v49 = vsub.s32 5, %v1420_v17  ;;  %v932_v50 = vrot.slane %v1426_v19, %v931_v48 }
 0x368   :  { %v1279_v54 = vpop.f32.mrf.mxu0 }
 0x369   :  { %1288 = vmatprep.mubr.msk.f32.mxu1 %vm46_vm0, %v762_v52  ;;  %v765_v59 = vmul.f32 %v1313_v57, %v1279_v54  ;;  %v940_v52 = vrot.slane %v1426_v19, %v939_v49 }
 0x36a   :  { %v749_v56 = vpop.f32.mrf.mxu0  ;;  %1289 = vmatmul.mubr.msk.f32.vlgmr.msra.gmra.mxu1 %vm46_vm0, %v763_v53 }
 0x36b   :  { %v764_v58 = vmul.f32 %v1311_v55, %v749_v56 }
 0x36d   :  { %1291 = vmatprep.mubr.msk.f32.mxu1 %vm46_vm0, %v764_v58 }
 0x36e   :  { %1292 = vmatmul.mubr.msk.f32.gmra.mxu1 %vm46_vm0, %v765_v59 }
 0x42a   :  { %v1290_v62 = vpop.f32.mrf.mxu1 }
 0x42b   :  { %v859_v63 = vadd.f32 %v1290_v62, %v774_v61 }
 0x42c   :  { %v853_v0 = vpop.f32.mrf.mxu1 }
 0x42d   :  { %v854_v1 = vadd.f32 %v853_v0, %v774_v61  ;;  %v873_v3 = vadd.f32 %v859_v63, %v1386_v8 }
 0x42e   :  { %v1293_v4 = vpop.f32.mrf.mxu1 }
 0x42f   :  { %v869_v5 = vadd.f32 %v1293_v4, %v774_v61  ;;  %v879_v6 = vsel %vm46_vm0, %v873_v3, 0.0  ;;  %v872_v7 = vadd.f32 %v854_v1, %v1379_v2 }
 0x430   :  { %880 = vadd.xlane.f32.xlu1 %v879_v6  ;;  %v863_v9 = vpop.f32.mrf.mxu1 }
 0x431   :  { %v864_v12 = vadd.f32 %v863_v9, %v774_v61  ;;  %v876_v13 = vsel %vm46_vm0, %v872_v7, 0.0  ;;  %v875_v14 = vadd.f32 %v869_v5, %v1400_v11 }
 0x432   :  { %877 = vadd.xlane.f32.xlu0 %v876_v13 }
 0x433   :  { %v885_v15 = vsel %vm46_vm0, %v875_v14, 0.0  ;;  %v874_v16 = vadd.f32 %v864_v12, %v1391_v10 }
 0x434   :  { %886 = vadd.xlane.f32.xlu1 %v885_v15 }
 0x435   :  { %v882_v8 = vsel %vm46_vm0, %v874_v16, 0.0 }
 0x436   :  { %883 = vadd.xlane.f32.xlu0 %v882_v8 }
 0x4b9   :  { %v881_v18 = vpop.xlane.xlu1 %880 }
 0x4ba   :  { %v890_v20 = vmul.f32 0.03125, %v881_v18 }
 0x4bb   :  { %v878_v22 = vpop.xlane.xlu0 %877 }
 0x4bc   :  { %v894_v2 = vsub.f32 %v873_v3, %v890_v20  ;;  %v889_v23 = vmul.f32 0.03125, %v878_v22 }
 0x4bd   :  { %v887_v24 = vpop.xlane.xlu1 %886 }
 0x4be   :  { %v893_v25 = vsub.f32 %v872_v7, %v889_v23  ;;  %v892_v26 = vmul.f32 0.03125, %v887_v24  ;;  %v898_v27 = vmul.f32 %v894_v2, %v894_v2 }
 0x4bf   :  { %v884_v28 = vpop.xlane.xlu0 %883 }
 0x4c0   :  { %v896_v11 = vsub.f32 %v875_v14, %v892_v26  ;;  %v891_v29 = vmul.f32 0.03125, %v884_v28  ;;  %v904_v30 = vsel %vm46_vm0, %v898_v27, 0.0  ;;  %v897_v32 = vmul.f32 %v893_v25, %v893_v25 }
 0x4c1   :  { %905 = vadd.xlane.f32.xlu1 %v904_v30 }
 0x4c2   :  { %v895_v10 = vsub.f32 %v874_v16, %v891_v29  ;;  %v901_v33 = vsel %vm46_vm0, %v897_v32, 0.0  ;;  %v900_v34 = vmul.f32 %v896_v11, %v896_v11 }
 0x4c3   :  { %902 = vadd.xlane.f32.xlu0 %v901_v33 }
 0x4c4   :  { %v910_v35 = vsel %vm46_vm0, %v900_v34, 0.0  ;;  %v899_v36 = vmul.f32 %v895_v10, %v895_v10 }
 0x4c5   :  { %911 = vadd.xlane.f32.xlu1 %v910_v35 }
 0x4c6   :  { %v907_v37 = vsel %vm46_vm0, %v899_v36, 0.0 }
 0x4c7   :  { %908 = vadd.xlane.f32.xlu0 %v907_v37 }
 0x54a   :  { %v906_v38 = vpop.xlane.xlu1 %905 }
 0x54b   :  { %v914_v39 = vmul.f32 0.03125, %v906_v38 }
 0x54c   :  { %v903_v40 = vpop.xlane.xlu0 %902 }
 0x54d   :  { %v918_v42 = vadd.f32 1e-12, %v914_v39  ;;  %v913_v31 = vmul.f32 0.03125, %v903_v40 }
 0x54e   :  { %v912_v41 = vpop.xlane.xlu1 %911 }
 0x54f   :  { %1314 = vrsqrt.f32 %v918_v42  ;;  %v917_v43 = vadd.f32 1e-12, %v913_v31  ;;  %v916_v44 = vmul.f32 0.03125, %v912_v41 }
 0x550   :  { %v909_v45 = vpop.xlane.xlu0 %908 }
 0x551   :  { %1316 = vrsqrt.f32 %v917_v43  ;;  %v920_v46 = vadd.f32 1e-12, %v916_v44  ;;  %v915_v47 = vmul.f32 0.03125, %v909_v45 }
 0x553   :  { %1318 = vrsqrt.f32 %v920_v46  ;;  %v919_v21 = vadd.f32 1e-12, %v915_v47 }
 0x555   :  { %1320 = vrsqrt.f32 %v919_v21 }
 0x55c   :  { %v1315_v51 = vpop.eup %1314 }
 0x55d   :  { %v926_v53 = vmul.f32 %v1315_v51, %v894_v2 }
 0x55e   :  { %v1317_v54 = vpop.eup %1316 }
 0x55f   :  { %v934_v55 = vmul.f32 %v932_v50, %v926_v53  ;;  %v925_v56 = vmul.f32 %v1317_v54, %v893_v25 }
 0x560   :  { %v1319_v57 = vpop.eup %1318 }
 0x561   :  { %v942_v58 = vadd.f32 %v940_v52, %v934_v55  ;;  %v933_v59 = vmul.f32 %v932_v50, %v925_v56  ;;  %v928_v60 = vmul.f32 %v1319_v57, %v896_v11 }
 0x562   :  { %v1321_v61 = vpop.eup %1320 }
 0x563   :  { %946 = vst.msk [vmem:[%s1707_s4 + $0x8] sm:$0xff] %vm46_vm0, %v942_v58  ;;  %v941_v17 = vadd.f32 %v940_v52, %v933_v59  ;;  %v936_v62 = vmul.f32 %v932_v50, %v928_v60  ;;  %v927_v63 = vmul.f32 %v1321_v61, %v895_v10 }
 0x565   :  { %945 = vst.msk [vmem:[%s1707_s4] sm:$0xff] %vm46_vm0, %v941_v17  ;;  %v944_v19 = vadd.f32 %v940_v52, %v936_v62  ;;  %v935_v0 = vmul.f32 %v932_v50, %v927_v63 }
 0x567   :  { %948 = vst.msk [vmem:[%s1707_s4 + $0x18] sm:$0xff] %vm46_vm0, %v944_v19  ;;  %v943_v1 = vadd.f32 %v940_v52, %v935_v0 }
 0x569   :  { %947 = vst.msk [vmem:[%s1707_s4 + $0x10] sm:$0xff] %vm46_vm0, %v943_v1 }
 0x56a   :  { %953 = vsyncpa [#allocation3], 1 }

</bundles_post_ra>
